<compile_context>
chip_gen: v5e
topology: v5e:2x2
jax: 0.10.0
libtpu: 0.0.40
codegen_flags: <defaults>
</compile_context>

<pallas_src>
import functools

import jax
import jax.numpy as jnp
from jax.experimental import pallas as pl
from jax.experimental.pallas import tpu as pltpu


def _l2_normalize(x):
    # Matches torch.nn.functional.normalize(p=2, dim=-1, eps=1e-12):
    #   x / max(||x||, 1e-12)  ==  x * rsqrt(max(||x||^2, 1e-24))
    # rsqrt lowers to the EUP slot and co-issues with the VPU multiplies.
    sum_sq = jnp.sum(x * x, axis=-1, keepdims=True)
    inv = jax.lax.rsqrt(jnp.maximum(sum_sq, 1e-24))
    return x * inv


def _make_errors_kernel(use_normalize, label_feature_enhanced,
                        use_prototype_reference, num_labels):
    """Pallas kernel body for one (tile_B, L, H) block of the batch."""
    inv_lm1 = 1.0 / float(num_labels - 1)  # static constant -> plain VPU vmul

    def kernel(*refs):
        if label_feature_enhanced:
            ref_points_ref, proto_ref, prompt_ref, out_ref = refs
        else:
            ref_points_ref, proto_ref, out_ref = refs
            prompt_ref = None

        ref_points = ref_points_ref[...]      # (L, H)   shared across batch
        prototypes = proto_ref[...]           # (tile_B, L, H)
        if use_normalize:
            ref_points = _l2_normalize(ref_points)
            prototypes = _l2_normalize(prototypes)

        phis = ref_points
        if label_feature_enhanced:
            prompt = prompt_ref[...]          # (tile_B, L, H)
            if use_normalize:
                prompt = _l2_normalize(prompt)
            phis = phis + prompt              # -> (tile_B, L, H)
        if use_prototype_reference:
            phis = phis + prototypes          # -> (tile_B, L, H)
        if phis.ndim == 2:
            phis = phis[None]                 # (1, L, H), broadcasts over batch

        # Leave-one-out mean of prototypes for every label i:
        #   mean(prototypes[j != i]) = (sum(prototypes) - prototypes[i]) / (L-1)
        # XLU sublane reduce + VPU broadcast-subtract (kept off the MXU).
        sum_proto = jnp.sum(prototypes, axis=-2, keepdims=True)   # (tile_B,1,H)
        loo_mean = (sum_proto - prototypes) * inv_lm1             # (tile_B,L,H)

        ref_hat = phis - loo_mean                                 # (tile_B,L,H)

        # Prototypes are already unit norm when use_normalize=True.
        proto_unit = prototypes if use_normalize else _l2_normalize(prototypes)
        out_ref[...] = _l2_normalize(ref_hat) - proto_unit

    return kernel


def _errors_pallas(reference_points, prototypes, prompt_embeds, *,
                   use_normalize, label_feature_enhanced,
                   use_prototype_reference, tile_b):
    """Batched errors computation.  prototypes / prompt_embeds: (B, L, H)."""
    B, L, H = prototypes.shape
    assert B % tile_b == 0

    kernel = _make_errors_kernel(
        use_normalize, label_feature_enhanced, use_prototype_reference, L)

    inputs = [reference_points, prototypes]
    in_specs = [
        pl.BlockSpec((L, H), lambda b: (0, 0)),            # shared, resident
        pl.BlockSpec((tile_b, L, H), lambda b: (b, 0, 0)),  # batch-tiled
    ]
    if label_feature_enhanced:
        inputs.append(prompt_embeds)
        in_specs.append(pl.BlockSpec((tile_b, L, H), lambda b: (b, 0, 0)))

    n_batched = len(inputs)  # batched inputs + output below
    cost = pl.CostEstimate(
        flops=int(10 * B * L * H),
        transcendentals=int(4 * B * L),
        bytes_accessed=int(4 * (L * H + n_batched * B * L * H)),
    )

    return pl.pallas_call(
        kernel,
        out_shape=jax.ShapeDtypeStruct((B, L, H), jnp.float32),
        grid_spec=pltpu.PrefetchScalarGridSpec(
            num_scalar_prefetch=0,
            grid=(B // tile_b,),
            in_specs=in_specs,
            out_specs=pl.BlockSpec((tile_b, L, H), lambda b: (b, 0, 0)),
        ),
        compiler_params=pltpu.CompilerParams(
            dimension_semantics=("parallel",)),
        cost_estimate=cost,
    )(*inputs)


@functools.partial(
    jax.jit,
    static_argnames=("use_normalize", "label_feature_enhanced",
                     "use_prototype_reference", "tile_b"),
)
def _tapnet_forward(reference_points, prototypes, prompt_embeds, *,
                    use_normalize, label_feature_enhanced,
                    use_prototype_reference, tile_b):
    errors = _errors_pallas(
        reference_points, prototypes, prompt_embeds,
        use_normalize=use_normalize,
        label_feature_enhanced=label_feature_enhanced,
        use_prototype_reference=use_prototype_reference,
        tile_b=tile_b,
    )                                                    # (B, L, H)
    num_labels = errors.shape[-2]
    # TODO(synk): SVD has no Pallas TPU equivalent; the batched null-space
    # extraction runs in plain JAX/XLA on the kernel's `errors` output.
    _, _, vh = jnp.linalg.svd(errors, full_matrices=True)
    v = jnp.swapaxes(vh, -1, -2)           # torch.svd returns V; jnp returns V^H
    return v[..., :, num_labels:]          # (B, H, H - L)


def _errors_ref(reference_points, prototypes, prompt_embeds, use_normalize,
                label_feature_enhanced, use_prototype_reference):
    """Pure-JAX reference of the errors computation (for the self-test)."""
    L = prototypes.shape[-2]
    ref = reference_points
    if use_normalize:
        ref = _l2_normalize(ref)
        prototypes = _l2_normalize(prototypes)
        if prompt_embeds is not None:
            prompt_embeds = _l2_normalize(prompt_embeds)
    phis = ref
    if label_feature_enhanced:
        phis = phis + prompt_embeds
    if use_prototype_reference:
        phis = phis + prototypes
    sum_p = jnp.sum(prototypes, axis=-2, keepdims=True)
    loo = (sum_p - prototypes) / (L - 1)
    ref_hat = phis - loo
    return _l2_normalize(ref_hat) - _l2_normalize(prototypes)


class TapNetPallas:
    """JAX/Pallas port of the PyTorch TapNet module (forward pass)."""

    def __init__(self, hidden_size, num_labels, key):
        assert num_labels >= 2, "leave-one-out mean requires num_labels >= 2"
        self.hidden_size = hidden_size
        self.num_labels = num_labels
        # xavier_normal_ on (num_labels, hidden_size):
        # std = sqrt(2 / (fan_in + fan_out)) = sqrt(2 / (hidden + num_labels))
        std = (2.0 / (hidden_size + num_labels)) ** 0.5
        self.reference_points = (
            std * jax.random.normal(key, (num_labels, hidden_size), jnp.float32)
        )

    def __call__(self, prototypes, use_normalize, label_feature_enhanced=False,
                 use_prototype_reference=False, prompt_embeds=None):
        """Single-instance forward, matching the PyTorch module signature."""
        out = self.forward_batched(
            prototypes[None], use_normalize,
            label_feature_enhanced=label_feature_enhanced,
            use_prototype_reference=use_prototype_reference,
            prompt_embeds=None if prompt_embeds is None else prompt_embeds[None],
        )
        return out[0]

    def forward_batched(self, prototypes, use_normalize,
                        label_feature_enhanced=False,
                        use_prototype_reference=False, prompt_embeds=None,
                        tile_b=None):
        """Batched forward over a leading batch axis of prototypes/prompts."""
        if label_feature_enhanced:
            assert prompt_embeds is not None
        B = prototypes.shape[0]
        if tile_b is None or tile_b > B or B % tile_b != 0:
            tile_b = B
        return _tapnet_forward(
            self.reference_points, prototypes,
            prompt_embeds if label_feature_enhanced else None,
            use_normalize=use_normalize,
            label_feature_enhanced=label_feature_enhanced,
            use_prototype_reference=use_prototype_reference,
            tile_b=int(tile_b),
        )


if __name__ == "__main__":
    hidden_size = 32
    num_labels = 8
    batch = 8

    key = jax.random.PRNGKey(0)
    k_ref, k_proto, k_prompt = jax.random.split(key, 3)

    model = TapNetPallas(hidden_size, num_labels, k_ref)

    protos_b = jax.random.normal(k_proto, (batch, num_labels, hidden_size),
                                 jnp.float32)
    prompts_b = jax.random.normal(k_prompt, (batch, num_labels, hidden_size),
                                  jnp.float32)

    # --- correctness of the Pallas errors kernel vs. pure-JAX reference -----
    errors = _errors_pallas(
        model.reference_points, protos_b, prompts_b,
        use_normalize=True, label_feature_enhanced=True,
        use_prototype_reference=True, tile_b=4)
    errors = jax.block_until_ready(errors)
    errors_ref = _errors_ref(
        model.reference_points, protos_b, prompts_b,
        use_normalize=True, label_feature_enhanced=True,
        use_prototype_reference=True)
    assert errors.shape == (batch, num_labels, hidden_size)
    assert jnp.allclose(errors, errors_ref, atol=1e-5, rtol=1e-5), (
        float(jnp.max(jnp.abs(errors - errors_ref))))

    # --- batched full forward (kernel + batched SVD), full feature path -----
    m_b = model.forward_batched(
        protos_b, use_normalize=True, label_feature_enhanced=True,
        use_prototype_reference=True, prompt_embeds=prompts_b, tile_b=4)
    m_b = jax.block_until_ready(m_b)
    assert m_b.shape == (batch, hidden_size, hidden_size - num_labels), m_b.shape
    assert jnp.all(jnp.isfinite(m_b))
    # Null-space property: errors @ M ~= 0 for every batch instance.
    resid = jnp.einsum("blh,bhk->blk", errors_ref, m_b)
    assert float(jnp.max(jnp.abs(resid))) < 1e-4

    # --- single-instance path (original module interface), no-normalize -----
    m1 = model(protos_b[0], use_normalize=False)
    m1 = jax.block_until_ready(m1)
    assert m1.shape == (hidden_size, hidden_size - num_labels), m1.shape
    assert jnp.all(jnp.isfinite(m1))

    print("KERNEL_OK")
</pallas_src>

<mosaic_0001>
module attributes {stable_mosaic.version = 11 : i64} {
  func.func @kernel(%arg0: i32, %arg1: memref<8x32xf32, #tpu.memory_space<vmem>>, %arg2: memref<4x8x32xf32, #tpu.memory_space<vmem>>, %arg3: memref<4x8x32xf32, #tpu.memory_space<vmem>>, %arg4: memref<4x8x32xf32, #tpu.memory_space<vmem>>) attributes {dimension_semantics = [#tpu.dimension_semantics<parallel>], iteration_bounds = array<i64: 2>, scalar_prefetch = 0 : i64, scratch_operands = 0 : i64, tpu.core_type = #tpu.core_type<tc>, window_params = [{pipeline_mode = #tpu.pipeline_mode<synchronous>, transform_indices = @transform_0, window_bounds = array<i64: 8, 32>}, {transform_indices = @transform_1, window_bounds = array<i64: 4, 8, 32>}, {transform_indices = @transform_2, window_bounds = array<i64: 4, 8, 32>}, {transform_indices = @transform_3, window_bounds = array<i64: 4, 8, 32>}]} {
    %c0 = arith.constant 0 : index
    %c0_0 = arith.constant 0 : index
    %0 = vector.load %arg1[%c0, %c0_0] : memref<8x32xf32, #tpu.memory_space<vmem>>, vector<8x32xf32>
    %c0_1 = arith.constant 0 : index
    %c0_2 = arith.constant 0 : index
    %c0_3 = arith.constant 0 : index
    %1 = vector.load %arg2[%c0_1, %c0_2, %c0_3] : memref<4x8x32xf32, #tpu.memory_space<vmem>>, vector<4x8x32xf32>
    %2 = arith.mulf %0, %0 : vector<8x32xf32>
    %cst = arith.constant dense<0.000000e+00> : vector<8xf32>
    %3 = vector.multi_reduction <add>, %2, %cst [1] : vector<8x32xf32> to vector<8xf32>
    %4 = vector.shape_cast %3 : vector<8xf32> to vector<8x1xf32>
    %cst_4 = arith.constant 1.000000e-24 : f32
    %5 = vector.broadcast %cst_4 : f32 to vector<8x1xf32>
    %6 = arith.maximumf %4, %5 : vector<8x1xf32>
    %7 = math.rsqrt %6 : vector<8x1xf32>
    %8 = vector.broadcast %7 : vector<8x1xf32> to vector<8x32xf32>
    %9 = arith.mulf %0, %8 : vector<8x32xf32>
    %10 = arith.mulf %1, %1 : vector<4x8x32xf32>
    %cst_5 = arith.constant dense<0.000000e+00> : vector<4x8xf32>
    %11 = vector.multi_reduction <add>, %10, %cst_5 [2] : vector<4x8x32xf32> to vector<4x8xf32>
    %12 = vector.shape_cast %11 : vector<4x8xf32> to vector<4x8x1xf32>
    %cst_6 = arith.constant 1.000000e-24 : f32
    %13 = vector.broadcast %cst_6 : f32 to vector<4x8x1xf32>
    %14 = arith.maximumf %12, %13 : vector<4x8x1xf32>
    %15 = math.rsqrt %14 : vector<4x8x1xf32>
    %16 = vector.broadcast %15 : vector<4x8x1xf32> to vector<4x8x32xf32>
    %17 = arith.mulf %1, %16 : vector<4x8x32xf32>
    %c0_7 = arith.constant 0 : index
    %c0_8 = arith.constant 0 : index
    %c0_9 = arith.constant 0 : index
    %18 = vector.load %arg3[%c0_7, %c0_8, %c0_9] : memref<4x8x32xf32, #tpu.memory_space<vmem>>, vector<4x8x32xf32>
    %19 = arith.mulf %18, %18 : vector<4x8x32xf32>
    %cst_10 = arith.constant dense<0.000000e+00> : vector<4x8xf32>
    %20 = vector.multi_reduction <add>, %19, %cst_10 [2] : vector<4x8x32xf32> to vector<4x8xf32>
    %21 = vector.shape_cast %20 : vector<4x8xf32> to vector<4x8x1xf32>
    %cst_11 = arith.constant 1.000000e-24 : f32
    %22 = vector.broadcast %cst_11 : f32 to vector<4x8x1xf32>
    %23 = arith.maximumf %21, %22 : vector<4x8x1xf32>
    %24 = math.rsqrt %23 : vector<4x8x1xf32>
    %25 = vector.broadcast %24 : vector<4x8x1xf32> to vector<4x8x32xf32>
    %26 = arith.mulf %18, %25 : vector<4x8x32xf32>
    %27 = vector.shape_cast %9 : vector<8x32xf32> to vector<1x8x32xf32>
    %28 = vector.broadcast %27 : vector<1x8x32xf32> to vector<4x8x32xf32>
    %29 = arith.addf %28, %26 : vector<4x8x32xf32>
    %30 = arith.addf %29, %17 : vector<4x8x32xf32>
    %cst_12 = arith.constant dense<0.000000e+00> : vector<4x32xf32>
    %31 = vector.multi_reduction <add>, %17, %cst_12 [1] : vector<4x8x32xf32> to vector<4x32xf32>
    %32 = vector.shape_cast %31 : vector<4x32xf32> to vector<4x1x32xf32>
    %33 = vector.broadcast %32 : vector<4x1x32xf32> to vector<4x8x32xf32>
    %34 = arith.subf %33, %17 : vector<4x8x32xf32>
    %cst_13 = arith.constant 0.142857149 : f32
    %35 = vector.broadcast %cst_13 : f32 to vector<4x8x32xf32>
    %36 = arith.mulf %34, %35 : vector<4x8x32xf32>
    %37 = arith.subf %30, %36 : vector<4x8x32xf32>
    %38 = arith.mulf %37, %37 : vector<4x8x32xf32>
    %cst_14 = arith.constant dense<0.000000e+00> : vector<4x8xf32>
    %39 = vector.multi_reduction <add>, %38, %cst_14 [2] : vector<4x8x32xf32> to vector<4x8xf32>
    %40 = vector.shape_cast %39 : vector<4x8xf32> to vector<4x8x1xf32>
    %cst_15 = arith.constant 1.000000e-24 : f32
    %41 = vector.broadcast %cst_15 : f32 to vector<4x8x1xf32>
    %42 = arith.maximumf %40, %41 : vector<4x8x1xf32>
    %43 = math.rsqrt %42 : vector<4x8x1xf32>
    %44 = vector.broadcast %43 : vector<4x8x1xf32> to vector<4x8x32xf32>
    %45 = arith.mulf %37, %44 : vector<4x8x32xf32>
    %46 = arith.subf %45, %17 : vector<4x8x32xf32>
    %c0_16 = arith.constant 0 : index
    %c0_17 = arith.constant 0 : index
    %c0_18 = arith.constant 0 : index
    %47 = vector.load %arg4[%c0_16, %c0_17, %c0_18] : memref<4x8x32xf32, #tpu.memory_space<vmem>>, vector<4x8x32xf32>
    tpu.vector_store %arg4[%c0_16, %c0_17, %c0_18], %46 {strides = array<i32>} : memref<4x8x32xf32, #tpu.memory_space<vmem>>, vector<4x8x32xf32>,
    return
  }
  func.func @transform_0(%arg0: i32) -> (i32, i32) {
    %c0_i32 = arith.constant 0 : i32
    %c0_i32_0 = arith.constant 0 : i32
    %c0_i32_1 = arith.constant 0 : i32
    return %c0_i32, %c0_i32_0 : i32, i32
  }
  func.func @transform_1(%arg0: i32) -> (i32, i32, i32) {
    %c0_i32 = arith.constant 0 : i32
    %c0_i32_0 = arith.constant 0 : i32
    %c0_i32_1 = arith.constant 0 : i32
    return %arg0, %c0_i32, %c0_i32_0 : i32, i32, i32
  }
  func.func @transform_2(%arg0: i32) -> (i32, i32, i32) {
    %c0_i32 = arith.constant 0 : i32
    %c0_i32_0 = arith.constant 0 : i32
    %c0_i32_1 = arith.constant 0 : i32
    return %arg0, %c0_i32, %c0_i32_0 : i32, i32, i32
  }
  func.func @transform_3(%arg0: i32) -> (i32, i32, i32) {
    %c0_i32 = arith.constant 0 : i32
    %c0_i32_0 = arith.constant 0 : i32
    %c0_i32_1 = arith.constant 0 : i32
    return %arg0, %c0_i32, %c0_i32_0 : i32, i32, i32
  }
}

</mosaic_0001>

<bundles_post_ra>
// kernel: tpu_custom_call.1
= control target key start
LH: loop header
LB: loop body
LE: loop exit
PB: predicated region body
PF: predicated region fallthrough
CT: control target
= control target key end

     0   :  { %8 = vsyncpa [#allocation3], 0  ;;  %s1316_s0 = inlined_call_operand.hbm [shape: f32[8,32], index: 0, kind: input, shape index: {}]   ;;  %s1317_s1 = inlined_call_operand.hbm [shape: f32[8,8,32], index: 1, kind: input, shape index: {}]   ;;  %s1318_s2 = inlined_call_operand.hbm [shape: f32[8,8,32], index: 2, kind: input, shape index: {}]   ;;  %s1319_s3 = inlined_call_operand.hbm [shape: f32[8,8,32], index: 3, kind: output, shape index: {}]  }
   0x1   :  { %9 = vsyncpa [#allocation6], 0 }
   0x2   :  { %11 = vsyncpa [#allocation6 + $0x1], 0 }
   0x3   :  { %12 = vsyncpa [#allocation4], 0 }
   0x4   :  { %14 = vsyncpa [#allocation4 + $0x1], 0  ;;  %s945_s12 = smov 0   ;;  %s947_s13 = smov 0  }
   0x5   :  { %s949_s14 = smov 0   ;;  %s951_s15 = smov 0  }
   0x6 LB: > { %s966_s16 = sadd.s32 1, %s918_s15   ;;  %s48_s17 = sadd.s32 1, %s914_s14  ;;  %s918_s15 = sphi %s951_s15, %s1332_s15   ;;  %s914_s14 = sphi %s949_s14, %s1331_s14   ;;  %s910_s13 = sphi %s947_s13, %s1330_s13   ;;  %s906_s12 = sphi %s945_s12, %s1329_s12  }
   0x7   : > { %s45_s18 = ssub.s32 %s918_s15, %s966_s16  ;;  %p55_p0 = scmp.ne.s32.totalorder %s914_s14, %s910_s13 }
   0x8   : > { %p46_p1 = scmp.eq.s32.totalorder %s45_s18, 0  ;;  %p56_p2 = scmp.eq.s32.totalorder %s918_s15, 0 }
   0x9   : > { %p692_p4 = scmp.lt.s32.totalorder %s918_s15, 2  ;;  %s149_s20 = sand.u32 1, %s918_s15  }
   0xa   : > { %s977_s19 = scalar_select %p46_p1, %s914_s14, %s48_s17  }
   0xb   : > { %p57_p5 = por %p56_p2, %p55_p0  ;;  %s151_s21 = sand.u32 1, %s914_s14  }
   0xc   : > { %s984_s22 = sshll.u32 %s151_s21, 5  ;;  %s663_s23 = sshll.u32 %s918_s15, 5 }
   0xd   : > { %s158_s26 = scalar_lea.hbm %s1317_s1, %s663_s23  ;;  %s153_s28 = scalar_lea.vmem [#allocation5], %s984_s22 }
   0xe   : > { %s159_s27 = sshll.u32 %s158_s26, 4  ;;  %s161_s29 = sshll.u32 %s153_s28, 4  ;;  %s160_s27 = int_to_ptr.hbm [resolvable:$true] %s159_s27  ;;  %s162_s29 = int_to_ptr.vmem [resolvable:$true] %s161_s29 }
   0xf   : > { %p993_p6 = pnand %p692_p4, %p57_p5  ;;  %s180_s6 = scalar_lea.hbm %s1318_s2, %s663_s23 }
  0x10   : > { %s1000_s7 = scalar_lea.sflag [#allocation6], %s149_s20  ;;  %s758_s8 = sshra.s32 %s160_s27, 4  ;;  %s759_s8 = int_to_ptr.hbm [resolvable:$true] %s758_s8 }
  0x11   : > { %s760_s9 = scalar_lea.hbm %s759_s8, 32  ;;  %p762_p8 = pneg %p993_p6 }
  0x12   : > { %p761_p7 = scmp.ne.s32.totalorder %s759_s8, %s760_s9  ;;  %s765_s17 = scalar_lea.hbm %s1317_s1, 64 }
  0x13   : > { %p766_p11 = scmp.lt.s32.totalorder %s759_s8, %s1317_s1  ;;  %p767_p12 = scmp.lt.s32.totalorder %s765_s17, %s760_s9 }
  0x14   : > { %p763_p9 = pnand %p762_p8, %p761_p7 }
  0x15   : > { %p768_p13 = por %p767_p12, %p766_p11 }
  0x16   : > { %p764_p10 = pneg %p763_p9 }
  0x18   : > { %p769_p1 = pnand %p768_p13, %p764_p10 }
  0x1a   : > { %772 = shalt.err (!%p769_p1)
}
  0x1b   : > { %s920_s20 = smov 128   ;;  %s921_s23 = smov 8  }
  0x1c   : > { %683 = dma.hbm_to_vmem [thread:$0]  (!%p993_p6), %s160_s27, 512, %s162_s29, %s1000_s7, %s920_s20, %s920_s20, %s921_s23  }
  0x1d   : > { %s181_s24 = sshll.u32 %s180_s6, 4  ;;  %s175_s25 = scalar_lea.vmem [#allocation7], %s984_s22  ;;  %s1019_s24 = int_to_ptr.hbm [resolvable:$true] %s181_s24 }
  0x1e   : > { %s1022_s26 = sshll.u32 %s175_s25, 4  ;;  %s1025_s28 = sadd.s32 4294967295, %s918_s15   ;;  %s184_s26 = int_to_ptr.vmem [resolvable:$true] %s1022_s26 }
  0x1f   : > { %s643_s4 = sadd.s32 4294967294, %s918_s15   ;;  %p61_p2 = scmp.ne.s32.totalorder %s910_s13, %s906_s12 }
  0x20   : > { %p62_p4 = scmp.eq.s32.totalorder %s1025_s28, 0  ;;  %p111_p5 = scmp.eq.s32.totalorder %s1025_s28, 1 }
  0x21   : > { %p117_p7 = scmp.eq.s32.totalorder %s643_s4, 1  ;;  %p644_p10 = scmp.ge.s32.totalorder %s918_s15, 1 }
  0x22   : > { %p1034_p9 = por %p62_p4, %p61_p2  ;;  %p1042_p11 = por %p111_p5, %p55_p0 }
  0x23   : > { %p1046_p12 = por %p117_p7, %p61_p2  ;;  %p124_p13 = scmp.lt.s32.totalorder %s918_s15, 3 }
  0x24   : > { %s136_s8 = sshll.u32 %s1316_s0, 4  ;;  %s922_s10 = smov [#allocation2]   ;;  %s137_s8 = int_to_ptr.hbm [resolvable:$true] %s136_s8 }
  0x25   : > { %p1055_p1 = pnand %p644_p10, %p124_p13  ;;  %s138_s11 = sshll.u32 %s922_s10, 4  ;;  %s139_s11 = int_to_ptr.vmem [resolvable:$true] %s138_s11 }
  0x26   : > { %s788_s17 = sshra.s32 %s1019_s24, 4  ;;  %s795_s4 = scalar_lea.hbm %s1318_s2, 64  ;;  %s789_s17 = int_to_ptr.hbm [resolvable:$true] %s788_s17 }
  0x27   : > { %s790_s18 = scalar_lea.hbm %s789_s17, 32  ;;  %p796_p10 = scmp.lt.s32.totalorder %s789_s17, %s1318_s2 }
  0x28   : > { %p791_p2 = scmp.ne.s32.totalorder %s789_s17, %s790_s18  ;;  %p797_p13 = scmp.lt.s32.totalorder %s795_s4, %s790_s18 }
  0x2a   : > { %p793_p5 = pnand %p791_p2, %p762_p8  ;;  %p798_p3 = por %p797_p13, %p796_p10 }
  0x2c   : > { %p794_p7 = pneg %p793_p5 }
  0x2e   : > { %p799_p0 = pnand %p798_p3, %p794_p7 }
  0x30   : > { %802 = shalt.err (!%p799_p0)
}
  0x31   : > { %686 = dma.hbm_to_vmem [thread:$0]  (!%p993_p6), %s1019_s24, 512, %s184_s26, %s1000_s7, %s920_s20, %s920_s20, %s921_s23  }
  0x32   : > { %p1325_p8 = pneg %p1055_p1  ;;  %195 = sbr.rel (%p1055_p1) target bundleno = 378 (0x17a), region = 32 }
  0x34   : > { %p677_p2 = pnand %p1325_p8, %p62_p4 }
  0x36   : > { %679 = dma.hbm_to_vmem [thread:$0]  (!%p677_p2), %s137_s8, 128, %s139_s11, [#allocation3]  }
  0x37   : > { %893 = dma.done.wait (%p62_p4), [#allocation3], 128  }
  0x38   : > { %895 = vsyncadd (%p62_p4), [#allocation3], 4294967168  ;;  %s202_s30 = sand.u32 1, %s1025_s28   ;;  %s204_s7 = sand.u32 1, %s910_s13  }
  0x39   : > { %s1093_s20 = sshll.u32 %s204_s7, 5  ;;  %s203_s23 = scalar_lea.sflag [#allocation6], %s202_s30 }
  0x3a   : > { %s206_s24 = scalar_lea.vmem [#allocation5], %s1093_s20 }
  0x3b   : > { %897 = dma.done.wait (%p1034_p9), %s203_s23, 1024  }
  0x3c   : > { %899 = vsyncadd (%p1034_p9), %s203_s23, 4294966272  ;;  %v1100_v0 = vld [vmem:[%s206_s24 + $0x10] sm:$0xff]  ;;  %vm254_vm0 = vcmask 261120   ;;  %v1102_v1 = vld [vmem:[%s206_s24] sm:$0xff]  ;;  %s216_s26 = scalar_lea.vmem [#allocation7], %s1093_s20  ;;  %s665_s27 = sshll.u32 %s1025_s28, 5 }
  0x3d   : > { %v1104_v2 = vld [vmem:[#allocation2] sm:$0xff]  ;;  %v272_v3 = vmul.f32 %v1100_v0, %v1100_v0  ;;  %v270_v4 = vmul.f32 %v1102_v1, %v1102_v1  ;;  %v1114_v7 = vld [vmem:[%s206_s24 + $0x8] sm:$0xff]  ;;  %v1120_v11 = vld [vmem:[%s216_s26] sm:$0xff]  ;;  %s244_s8 = scalar_lea.vmem [#allocation8], %s1093_s20  ;;  %s534_s11 = scalar_lea.hbm %s1319_s3, %s665_s27 }
  0x3e   : > { %v253_v5 = vmul.f32 %v1104_v2, %v1104_v2  ;;  %v1112_v6 = vld [vmem:[%s206_s24 + $0x18] sm:$0xff]  ;;  %v271_v13 = vmul.f32 %v1114_v7, %v1114_v7  ;;  %v338_v14 = vmul.f32 %v1120_v11, %v1120_v11  ;;  %v1131_v18 = vld [vmem:[%s216_s26 + $0x10] sm:$0xff]  ;;  %v1133_v19 = vld [vmem:[%s216_s26 + $0x8] sm:$0xff]  ;;  %s535_s28 = sshll.u32 %s244_s8, 4  ;;  %s537_s17 = sshll.u32 %s534_s11, 4  ;;  %s536_s28 = int_to_ptr.vmem [resolvable:$true] %s535_s28  ;;  %s538_s17 = int_to_ptr.hbm [resolvable:$true] %s537_s17 }
  0x3f   : > { %v280_v8 = vsel %vm254_vm0, %v272_v3, 0.0  ;;  %v274_v9 = vsel %vm254_vm0, %v270_v4, 0.0  ;;  %v273_v12 = vmul.f32 %v1112_v6, %v1112_v6  ;;  %v1135_v20 = vld [vmem:[%s216_s26 + $0x18] sm:$0xff]  ;;  %v340_v21 = vmul.f32 %v1131_v18, %v1131_v18  ;;  %s523_s18 = scalar_lea.sflag [#allocation4], %s204_s7  ;;  %s862_s21 = sshra.s32 %s538_s17, 4  ;;  %s863_s21 = int_to_ptr.hbm [resolvable:$true] %s862_s21 }
  0x40   : > { %v255_v10 = vsel %vm254_vm0, %v253_v5, 0.0  ;;  %281 = vadd.xlane.f32.xlu1 %v280_v8  ;;  %275 = vadd.xlane.f32.xlu0 %v274_v9  ;;  %v277_v16 = vsel %vm254_vm0, %v271_v13, 0.0  ;;  %v342_v17 = vsel %vm254_vm0, %v338_v14, 0.0  ;;  %v339_v22 = vmul.f32 %v1133_v19, %v1133_v19  ;;  %s864_s25 = scalar_lea.hbm %s863_s21, 32  ;;  %s868_s6 = scalar_lea.hbm %s1319_s3, 64 }
  0x41   : > { %256 = vadd.xlane.f32.xlu2 %v255_v10  ;;  %v283_v15 = vsel %vm254_vm0, %v273_v12, 0.0  ;;  %v341_v23 = vmul.f32 %v1135_v20, %v1135_v20  ;;  %v348_v24 = vsel %vm254_vm0, %v340_v21, 0.0  ;;  %p865_p3 = scmp.ne.s32.totalorder %s863_s21, %s864_s25  ;;  %p869_p9 = scmp.lt.s32.totalorder %s863_s21, %s1319_s3 }
  0x42   : > { %v345_v25 = vsel %vm254_vm0, %v339_v22, 0.0  ;;  %p870_p1 = scmp.lt.s32.totalorder %s868_s6, %s864_s25 }
  0x43   : > { %v351_v26 = vsel %vm254_vm0, %v341_v23, 0.0  ;;  %p866_p6 = pnand %p865_p3, %p1042_p11 }
  0x44   : > { %p871_p0 = por %p870_p1, %p869_p9 }
  0x45   : > { %p867_p4 = pneg %p866_p6 }
  0x47   : > { %p872_p5 = pnand %p871_p0, %p867_p4 }
  0x48   : > { %284 = vadd.xlane.f32.xlu1 %v283_v15  ;;  %278 = vadd.xlane.f32.xlu0 %v277_v16 }
  0x49   : > { %343 = vadd.xlane.f32.xlu2 %v342_v17 }
  0x50   : > { %349 = vadd.xlane.f32.xlu1 %v348_v24  ;;  %346 = vadd.xlane.f32.xlu0 %v345_v25 }
  0x51   : > { %352 = vadd.xlane.f32.xlu2 %v351_v26 }
  0xb3   : > { %v282_v27 = vpop.xlane.xlu1 %281  ;;  %v276_v28 = vpop.xlane.xlu0 %275 }
  0xb4   : > { %v288_v29 = vmax.f32 %v282_v27, 1e-24  ;;  %v286_v30 = vmax.f32 %v276_v28, 1e-24  ;;  %v257_v31 = vpop.xlane.xlu2 %256 }
  0xb5   : > { %v258_v32 = vmax.f32 %v257_v31, 1e-24 }
  0xb6   : > { %732 = vrsqrt.f32 %v288_v29  ;;  %vm316_vm1 = vweird.f32 %v288_v29  ;;  %vm296_vm3 = vweird.f32 %v286_v30 }
  0xb7   : > { %734 = vrsqrt.f32 %v286_v30  ;;  %vm265_vm5 = vweird.f32 %v258_v32 }
  0xb8   : > { %736 = vrsqrt.f32 %v258_v32 }
  0xbb   : > { %v285_v33 = vpop.xlane.xlu1 %284  ;;  %v279_v34 = vpop.xlane.xlu0 %278 }
  0xbc   : > { %v733_v35 = vpop.eup %732  ;;  %v1146_v36 = vmax.f32 %v285_v33, 1e-24  ;;  %v1148_v37 = vmax.f32 %v279_v34, 1e-24  ;;  %v344_v38 = vpop.xlane.xlu2 %343 }
  0xbd   : > { %v735_v39 = vpop.eup %734  ;;  %v311_v40 = vmul.f32 %v733_v35, %v288_v29  ;;  %v1150_v41 = vmax.f32 %v344_v38, 1e-24  ;;  %vm317_vm2 = vweird.f32 %v733_v35 }
  0xbe   : > { %v1152_v42 = vpop.eup %736  ;;  %v291_v43 = vmul.f32 %v735_v39, %v286_v30  ;;  %738 = vrsqrt.f32 %v1146_v36  ;;  %vm297_vm4 = vweird.f32 %v735_v39  ;;  %vm318_vm7 = vmor %vm316_vm1, %vm317_vm2  ;;  %vm326_vm9 = vweird.f32 %v1146_v36 }
  0xbf   : > { %v312_v44 = vmul.f32 %v733_v35, %v311_v40  ;;  %v260_v45 = vmul.f32 %v1152_v42, %v258_v32  ;;  %740 = vrsqrt.f32 %v1148_v37  ;;  %vm266_vm6 = vweird.f32 %v1152_v42  ;;  %vm298_vm8 = vmor %vm296_vm3, %vm297_vm4 }
  0xc0   : > { %v292_v46 = vmul.f32 %v735_v39, %v291_v43  ;;  %742 = vrsqrt.f32 %v1150_v41  ;;  %vm306_vm10 = vweird.f32 %v1148_v37  ;;  %vm1184_vm11 = vmor %vm265_vm5, %vm266_vm6  ;;  %vm364_vm13 = vweird.f32 %v1150_v41 }
  0xc1   : > { %v313_v47 = vmul.f32 0.5, %v312_v44  ;;  %v261_v48 = vmul.f32 %v1152_v42, %v260_v45 }
  0xc2   : > { %v293_v49 = vmul.f32 0.5, %v292_v46 }
  0xc3   : > { %v314_v50 = vsub.f32 1.5, %v313_v47  ;;  %v262_v51 = vmul.f32 0.5, %v261_v48  ;;  %v350_v52 = vpop.xlane.xlu1 %349  ;;  %v347_v53 = vpop.xlane.xlu0 %346 }
  0xc4   : > { %v739_v54 = vpop.eup %738  ;;  %v294_v55 = vsub.f32 1.5, %v293_v49  ;;  %v1159_v56 = vmax.f32 %v350_v52, 1e-24  ;;  %v1167_v3 = vmax.f32 %v347_v53, 1e-24  ;;  %v353_v14 = vpop.xlane.xlu2 %352 }
  0xc5   : > { %v741_v57 = vpop.eup %740  ;;  %v315_v58 = vmul.f32 %v733_v35, %v314_v50  ;;  %v263_v59 = vsub.f32 1.5, %v262_v51  ;;  %v321_v60 = vmul.f32 %v739_v54, %v1146_v36  ;;  %vm327_vm12 = vweird.f32 %v739_v54 }
  0xc6   : > { %v743_v61 = vpop.eup %742  ;;  %v295_v62 = vmul.f32 %v735_v39, %v294_v55  ;;  %v301_v63 = vmul.f32 %v741_v57, %v1148_v37  ;;  %744 = vrsqrt.f32 %v1159_v56  ;;  %v1193_v24 = vmax.f32 %v353_v14, 1e-24  ;;  %vm328_vm1 = vmor %vm326_vm9, %vm327_vm12 }
  0xc7   : > { %v319_v4 = vsel %vm318_vm7, %v733_v35, %v315_v58  ;;  %v264_v5 = vmul.f32 %v1152_v42, %v263_v59  ;;  %v322_v8 = vmul.f32 %v739_v54, %v321_v60  ;;  %v359_v9 = vmul.f32 %v743_v61, %v1150_v41 }
  0xc8   : > { %v1174_v10 = vmul.f32 %v319_v4, %v1100_v0  ;;  %v299_v12 = vsel %vm298_vm8, %v735_v39, %v295_v62  ;;  %v302_v13 = vmul.f32 %v741_v57, %v301_v63  ;;  %746 = vrsqrt.f32 %v1167_v3 }
  0xc9   : > { %v1178_v15 = vmul.f32 %v299_v12, %v1102_v1  ;;  %v323_v16 = vmul.f32 0.5, %v322_v8  ;;  %v360_v17 = vmul.f32 %v743_v61, %v359_v9  ;;  %v268_v1 = vsel %vm1184_vm11, %v1152_v42, %v264_v5 }
  0xca   : > { %v303_v0 = vmul.f32 0.5, %v302_v13  ;;  %vm307_vm14 = vweird.f32 %v741_v57  ;;  %v424_v28 = vsel %vm254_vm0, %v1174_v10, 0.0  ;;  %vm365_vm15 = vweird.f32 %v743_v61 }
  0xcb   : > { %v324_v22 = vsub.f32 1.5, %v323_v16  ;;  %v361_v23 = vmul.f32 0.5, %v360_v17  ;;  %v410_v27 = vsel %vm254_vm0, %v1178_v15, 0.0  ;;  %v1201_v32 = vmul.f32 %v268_v1, %v1104_v2  ;;  %vm308_vm2 = vmor %vm306_vm10, %vm307_vm14 }
  0xcc   : > { %v745_v25 = vpop.eup %744  ;;  %v304_v26 = vsub.f32 1.5, %v303_v0  ;;  %748 = vrsqrt.f32 %v1193_v24  ;;  %v411_v34 = vrot.slane %v410_v27, 4  ;;  %v425_v40 = vrot.slane %v424_v28, 4  ;;  %vm366_vm3 = vmor %vm364_vm13, %vm365_vm15 }
  0xcd   : > { %v325_v29 = vmul.f32 %v739_v54, %v324_v22  ;;  %v362_v30 = vsub.f32 1.5, %v361_v23  ;;  %v379_v31 = vmul.f32 %v745_v25, %v1159_v56  ;;  %vm384_vm4 = vweird.f32 %v1159_v56 }
  0xce   : > { %v305_v33 = vmul.f32 %v741_v57, %v304_v26  ;;  %v747_v42 = vpop.eup %746  ;;  %v412_v36 = vadd.f32 %v411_v34, %v410_v27  ;;  %vm374_vm5 = vweird.f32 %v1167_v3  ;;  %v426_v48 = vadd.f32 %v425_v40, %v424_v28 }
  0xcf   : > { %v329_v35 = vsel %vm328_vm1, %v739_v54, %v325_v29  ;;  %v363_v38 = vmul.f32 %v743_v61, %v362_v30  ;;  %v380_v39 = vmul.f32 %v745_v25, %v379_v31  ;;  %v369_v46 = vmul.f32 %v747_v42, %v1167_v3 }
  0xd0   : > { %v1210_v43 = vmul.f32 %v329_v35, %v1112_v6  ;;  %v309_v2 = vsel %vm308_vm2, %v741_v57, %v305_v33  ;;  %v413_v6 = vrot.slane %v412_v36, 2  ;;  %vm385_vm6 = vweird.f32 %v745_v25 }
  0xd1   : > { %v1217_v44 = vmul.f32 %v309_v2, %v1114_v7  ;;  %v367_v37 = vsel %vm366_vm3, %v743_v61, %v363_v38  ;;  %v381_v45 = vmul.f32 0.5, %v380_v39  ;;  %v370_v41 = vmul.f32 %v747_v42, %v369_v46  ;;  %vm386_vm8 = vmor %vm384_vm4, %vm385_vm6 }
  0xd2   : > { %v398_v47 = vmul.f32 %v367_v37, %v1120_v11  ;;  %v749_v51 = vpop.eup %748  ;;  %v414_v52 = vadd.f32 %v413_v6, %v412_v36  ;;  %v427_v7 = vrot.slane %v426_v48, 2  ;;  %v431_v54 = vsel %vm254_vm0, %v1210_v43, 0.0 }
  0xd3   : > { %v382_v49 = vsub.f32 1.5, %v381_v45  ;;  %v417_v50 = vsel %vm254_vm0, %v1217_v44, 0.0  ;;  %v371_v57 = vmul.f32 0.5, %v370_v41  ;;  %vm375_vm7 = vweird.f32 %v747_v42 }
  0xd4   : > { %v418_v53 = vrot.slane %v417_v50, 4  ;;  %v389_v11 = vmul.f32 %v749_v51, %v1193_v24  ;;  %v402_v58 = vadd.f32 %v398_v47, %v1201_v32  ;;  %v415_v59 = vrot.slane %v414_v52, 1  ;;  %vm376_vm10 = vmor %vm374_vm5, %vm375_vm7 }
  0xd5   : > { %v383_v55 = vmul.f32 %v745_v25, %v382_v49  ;;  %v428_v60 = vadd.f32 %v427_v7, %v426_v48  ;;  %v372_v63 = vsub.f32 1.5, %v371_v57  ;;  %v432_v5 = vrot.slane %v431_v54, 4 }
  0xd6   : > { %v419_v61 = vadd.f32 %v418_v53, %v417_v50  ;;  %v390_v4 = vmul.f32 %v749_v51, %v389_v11  ;;  %v416_v9 = vadd.f32 %v415_v59, %v414_v52  ;;  %vm395_vm9 = vweird.f32 %v749_v51 }
  0xd7   : > { %v387_v62 = vsel %vm386_vm8, %v745_v25, %v383_v55  ;;  %v429_v12 = vrot.slane %v428_v60, 1  ;;  %v373_v14 = vmul.f32 %v747_v42, %v372_v63  ;;  %v433_v17 = vadd.f32 %v432_v5, %v431_v54 }
  0xd8   : > { %v400_v8 = vmul.f32 %v387_v62, %v1131_v18  ;;  %v420_v13 = vrot.slane %v419_v61, 2  ;;  %v391_v16 = vmul.f32 0.5, %v390_v4  ;;  %v438_v56 = vsub.f32 %v416_v9, %v1178_v15 }
  0xd9   : > { %v430_v0 = vadd.f32 %v429_v12, %v428_v60  ;;  %v377_v22 = vsel %vm376_vm10, %v747_v42, %v373_v14  ;;  %v406_v18 = vadd.f32 %v402_v58, %v1178_v15  ;;  %v434_v25 = vrot.slane %v433_v17, 2 }
  0xda   : > { %v404_v21 = vadd.f32 %v400_v8, %v1201_v32  ;;  %v421_v1 = vadd.f32 %v420_v13, %v419_v61  ;;  %v392_v23 = vsub.f32 1.5, %v391_v16  ;;  %v399_v26 = vmul.f32 %v377_v22, %v1133_v19 }
  0xdb   : > { %v442_v27 = vmul.f32 0.14285715, %v438_v56  ;;  %v440_v29 = vsub.f32 %v430_v0, %v1174_v10  ;;  %vm394_vm11 = vweird.f32 %v1193_v24  ;;  %v435_v31 = vadd.f32 %v434_v25, %v433_v17 }
  0xdc   : > { %v408_v28 = vadd.f32 %v404_v21, %v1174_v10  ;;  %v393_v3 = vmul.f32 %v749_v51, %v392_v23  ;;  %v422_v30 = vrot.slane %v421_v1, 1  ;;  %vm396_vm12 = vmor %vm394_vm11, %vm395_vm9  ;;  %v403_v38 = vadd.f32 %v399_v26, %v1201_v32 }
  0xdd   : > { %v1242_v33 = vsub.f32 %v406_v18, %v442_v27  ;;  %v444_v34 = vmul.f32 0.14285715, %v440_v29  ;;  %v436_v19 = vrot.slane %v435_v31, 1 }
  0xde   : > { %v397_v35 = vsel %vm396_vm12, %v749_v51, %v393_v3  ;;  %v423_v39 = vadd.f32 %v422_v30, %v421_v1  ;;  %v407_v47 = vadd.f32 %v403_v38, %v1217_v44 }
  0xdf   : > { %v401_v40 = vmul.f32 %v397_v35, %v1135_v20  ;;  %v450_v42 = vmul.f32 %v1242_v33, %v1242_v33  ;;  %v1248_v2 = vsub.f32 %v408_v28, %v444_v34  ;;  %v437_v36 = vadd.f32 %v436_v19, %v435_v31 }
  0xe0   : > { %v439_v24 = vsub.f32 %v423_v39, %v1217_v44 }
  0xe1   : > { %v454_v37 = vsel %vm254_vm0, %v450_v42, 0.0  ;;  %v452_v45 = vmul.f32 %v1248_v2, %v1248_v2  ;;  %v405_v46 = vadd.f32 %v401_v40, %v1201_v32  ;;  %v441_v20 = vsub.f32 %v437_v36, %v1210_v43 }
  0xe2   : > { %455 = vadd.xlane.f32.xlu0 %v454_v37  ;;  %v443_v6 = vmul.f32 0.14285715, %v439_v24 }
  0xe3   : > { %v460_v48 = vsel %vm254_vm0, %v452_v45, 0.0  ;;  %v409_v41 = vadd.f32 %v405_v46, %v1210_v43  ;;  %v445_v50 = vmul.f32 0.14285715, %v441_v20 }
  0xe4   : > { %461 = vadd.xlane.f32.xlu2 %v460_v48  ;;  %v1258_v49 = vsub.f32 %v407_v47, %v443_v6 }
  0xe5   : > { %v1263_v52 = vsub.f32 %v409_v41, %v445_v50 }
  0xe6   : > { %v451_v51 = vmul.f32 %v1258_v49, %v1258_v49 }
  0xe7   : > { %v453_v7 = vmul.f32 %v1263_v52, %v1263_v52 }
  0xe8   : > { %v457_v32 = vsel %vm254_vm0, %v451_v51, 0.0 }
  0xe9   : > { %458 = vadd.xlane.f32.xlu1 %v457_v32  ;;  %v463_v53 = vsel %vm254_vm0, %v453_v7, 0.0 }
  0xea   : > { %464 = vadd.xlane.f32.xlu0 %v463_v53 }
 0x155   : > { %v456_v54 = vpop.xlane.xlu0 %455 }
 0x156   : > { %v466_v55 = vmax.f32 %v456_v54, 1e-24 }
 0x157   : > { %v462_v57 = vpop.xlane.xlu2 %461 }
 0x158   : > { %750 = vrsqrt.f32 %v466_v55  ;;  %v468_v11 = vmax.f32 %v462_v57, 1e-24  ;;  %vm476_vm14 = vweird.f32 %v466_v55 }
 0x15a   : > { %752 = vrsqrt.f32 %v468_v11  ;;  %vm496_vm2 = vweird.f32 %v468_v11 }
 0x15c   : > { %v459_v58 = vpop.xlane.xlu1 %458 }
 0x15d   : > { %v467_v59 = vmax.f32 %v459_v58, 1e-24  ;;  %v465_v61 = vpop.xlane.xlu0 %464 }
 0x15e   : > { %v751_v60 = vpop.eup %750  ;;  %v469_v4 = vmax.f32 %v465_v61, 1e-24 }
 0x15f   : > { %v471_v62 = vmul.f32 %v751_v60, %v466_v55  ;;  %754 = vrsqrt.f32 %v467_v59  ;;  %vm477_vm13 = vweird.f32 %v751_v60  ;;  %vm486_vm5 = vweird.f32 %v467_v59 }
 0x160   : > { %v753_v63 = vpop.eup %752  ;;  %756 = vrsqrt.f32 %v469_v4  ;;  %vm478_vm1 = vmor %vm476_vm14, %vm477_vm13  ;;  %vm506_vm8 = vweird.f32 %v469_v4 }
 0x161   : > { %v472_v5 = vmul.f32 %v751_v60, %v471_v62  ;;  %v491_v8 = vmul.f32 %v753_v63, %v468_v11  ;;  %vm497_vm15 = vweird.f32 %v753_v63 }
 0x162   : > { %vm498_vm3 = vmor %vm496_vm2, %vm497_vm15 }
 0x163   : > { %v473_v9 = vmul.f32 0.5, %v472_v5  ;;  %v492_v12 = vmul.f32 %v753_v63, %v491_v8 }
 0x165   : > { %v755_v13 = vpop.eup %754  ;;  %v474_v14 = vsub.f32 1.5, %v473_v9  ;;  %v493_v16 = vmul.f32 0.5, %v492_v12 }
 0x166   : > { %v481_v17 = vmul.f32 %v755_v13, %v467_v59  ;;  %v757_v0 = vpop.eup %756  ;;  %vm487_vm4 = vweird.f32 %v755_v13 }
 0x167   : > { %v475_v56 = vmul.f32 %v751_v60, %v474_v14  ;;  %v494_v21 = vsub.f32 1.5, %v493_v16  ;;  %v501_v18 = vmul.f32 %v757_v0, %v469_v4  ;;  %vm488_vm6 = vmor %vm486_vm5, %vm487_vm4  ;;  %vm507_vm7 = vweird.f32 %v757_v0 }
 0x168   : > { %v482_v1 = vmul.f32 %v755_v13, %v481_v17  ;;  %vm508_vm9 = vmor %vm506_vm8, %vm507_vm7 }
 0x169   : > { %v479_v22 = vsel %vm478_vm1, %v751_v60, %v475_v56  ;;  %v495_v23 = vmul.f32 %v753_v63, %v494_v21  ;;  %v502_v28 = vmul.f32 %v757_v0, %v501_v18 }
 0x16a   : > { %v510_v25 = vmul.f32 %v479_v22, %v1242_v33  ;;  %v483_v26 = vmul.f32 0.5, %v482_v1 }
 0x16b   : > { %v499_v27 = vsel %vm498_vm3, %v753_v63, %v495_v23  ;;  %v503_v31 = vmul.f32 0.5, %v502_v28 }
 0x16c   : > { %v514_v29 = vsub.f32 %v510_v25, %v1178_v15  ;;  %v512_v3 = vmul.f32 %v499_v27, %v1248_v2  ;;  %v484_v30 = vsub.f32 1.5, %v483_v26 }
 0x16d   : > { %v504_v33 = vsub.f32 1.5, %v503_v31 }
 0x16e   : > { %518 = vst.msk [vmem:[%s244_s8] sm:$0xff] %vm254_vm0, %v514_v29  ;;  %v516_v34 = vsub.f32 %v512_v3, %v1174_v10  ;;  %v485_v35 = vmul.f32 %v755_v13, %v484_v30 }
 0x16f   : > { %v505_v39 = vmul.f32 %v757_v0, %v504_v33 }
 0x170   : > { %520 = vst.msk [vmem:[%s244_s8 + $0x10] sm:$0xff] %vm254_vm0, %v516_v34  ;;  %v489_v15 = vsel %vm488_vm6, %v755_v13, %v485_v35 }
 0x171   : > { %v511_v38 = vmul.f32 %v489_v15, %v1258_v49  ;;  %v509_v19 = vsel %vm508_vm9, %v757_v0, %v505_v39 }
 0x172   : > { %v513_v40 = vmul.f32 %v509_v19, %v1263_v52 }
 0x173   : > { %v515_v10 = vsub.f32 %v511_v38, %v1217_v44 }
 0x174   : > { %v517_v42 = vsub.f32 %v513_v40, %v1210_v43 }
 0x175   : > { %519 = vst.msk [vmem:[%s244_s8 + $0x8] sm:$0xff] %vm254_vm0, %v515_v10 }
 0x176   : > { %521 = vst.msk [vmem:[%s244_s8 + $0x18] sm:$0xff] %vm254_vm0, %v517_v42 }
 0x177   : > { %875 = shalt.err (!%p872_p5)
}
 0x178   : > { %s923_s7 = smov 128   ;;  %s924_s23 = smov 8  }
 0x179   : > { %674 = dma.vmem_to_hbm [thread:$0]  (%p1042_p11), %s536_s28, 512, %s538_s17, %s523_s18, %s923_s7, %s923_s7, %s924_s23  }
 0x17a PF: > { %s552_s24 = sand.u32 1, %s906_s12   ;;  %p1328_p7 = scmp.ge.s32.totalorder %s918_s15, 2 }
 0x17b   : > { %s553_s26 = scalar_lea.sflag [#allocation4], %s552_s24 }
 0x17c   : > { %p688_p10 = pnand %p1328_p7, %p1046_p12 }
 0x17e   : > { %p689_p13 = pneg %p688_p10 }
 0x180   : > { %901 = dma.done.wait (%p689_p13), %s553_s26, 512  }
 0x181   : > { %903 = vsyncadd (%p689_p13), %s553_s26, 4294966784  ;;  %p17_p8 = scmp.ge.s32.totalorder %s966_s16, 4   ;;  %s1329_s12 = smov %s910_s13 }
 0x182   : > { %s1330_s13 = smov %s914_s14  ;;  %s1331_s14 = smov %s977_s19 }
 0x183   : > { %s1332_s15 = smov %s966_s16  ;;  %19 = sbr.rel (!%p17_p8) target bundleno = 6 (0x6), region = 93 }
 0x188   :  { %559 = vsyncpa [#allocation3], 1 }
 0x189   :  { %561 = vsyncpa [#allocation3 + $0x1], 1 }
 0x18a   :  { %562 = vsyncpa [#allocation6], 1 }
 0x18b   :  { %564 = vsyncpa [#allocation6 + $0x1], 1 }
 0x18c   :  { %565 = vsyncpa [#allocation4], 1 }
 0x18d   :  { %567 = vsyncpa [#allocation4 + $0x1], 1 }

</bundles_post_ra>
